<compile_context>
chip_gen: v7x
topology: tpu7x:2x2x1
jax: 0.10.0
libtpu: 0.0.40
codegen_flags: <defaults>
</compile_context>

<pallas_src>
import jax
import jax.numpy as jnp
from jax.experimental import pallas as pl
from jax.experimental.pallas import tpu as pltpu


def _round_up(a, m):
    return (a + m - 1) // m * m


def _patch_embed_kernel(patches_ref, w_ref, posb_ref, o_ref):
    # patches_ref: (Bt, tile_n, K_pad) bf16   patch rows (row 0 of the global
    #                                         matrix is the zero "cls slot")
    # w_ref:       (K_pad, E_pad)      bf16   projection weight, (K, E) layout
    # posb_ref:    (tile_n, E_pad)     f32    pos (+ conv bias; row 0 = cls+pos0)
    # o_ref:       (Bt, tile_n, E_pad)        aligned, lane-dense output tile
    bt = patches_ref.shape[0]
    # Static unroll over the batch block: Bt back-to-back MXU matmuls sharing
    # the resident weight tile, amortizing per-grid-step overhead.
    for i in range(bt):
        emb = jnp.dot(patches_ref[i], w_ref[...],
                      preferred_element_type=jnp.float32)        # MXU, f32 acc
        o_ref[i] = (emb + posb_ref[...]).astype(o_ref.dtype)     # bias/pos folded


def patch_embedding(x, conv_w, conv_b, cls_token, pos_token, patch_size,
                    *, out_dtype=None):
    """x: (B, C, H, W) float32 (NCHW, matching the PyTorch module)."""
    B, C, H, W = x.shape
    P = patch_size
    assert H % P == 0 and W % P == 0, "image size must be divisible by patch size"
    nh, nw = H // P, W // P
    N = nh * nw
    E = conv_w.shape[0]
    K = C * P * P
    R = N + 1                                   # cls row + N patch rows
    out_dtype = out_dtype or x.dtype

    # Lane-dense padding of the contraction and embedding dims.
    K_pad = _round_up(K, 128)
    E_pad = _round_up(E, 128)

    # Row tiling: uniform, sublane-aligned tiles for any N (no fall-through).
    if R >= 512:
        tile_n = 256
    else:
        tile_n = _round_up(R, 8)
    R_pad = _round_up(R, tile_n)
    nt = R_pad // tile_n

    # Batch blocking (amortize per-step overhead / fill the MXU).
    for cand in (8, 4, 2, 1):
        if B % cand == 0:
            Bt = cand
            break

    # --- glue: im2col of the stride-P conv (flatten order (C, P, P) matches the
    # conv-weight reshape).  Row 0 is the zero "cls slot"; rows/cols zero-padded
    # to (R_pad, K_pad); bf16 for the MXU and to halve DMA bytes.
    patches = x.reshape(B, C, nh, P, nw, P).transpose(0, 2, 4, 1, 3, 5)
    patches = patches.reshape(B, N, K)
    patches = jnp.pad(patches,
                      ((0, 0), (1, R_pad - R), (0, K_pad - K))
                      ).astype(jnp.bfloat16)                      # (B, R_pad, K_pad)

    # Parameter prep (tiny, one-off; in a real model do this at load time).
    w_mat = jnp.pad(conv_w.reshape(E, K).T.astype(jnp.float32),
                    ((0, K_pad - K), (0, E_pad - E))).astype(jnp.bfloat16)

    pos = pos_token.reshape(R, E).astype(jnp.float32)
    row0 = cls_token.reshape(1, E).astype(jnp.float32) + pos[0:1, :]   # cls + pos[0]
    rows = pos[1:, :] + conv_b.reshape(1, E).astype(jnp.float32)       # pos + bias
    posb = jnp.concatenate([row0, rows], axis=0)                       # (R, E)
    posb = jnp.pad(posb, ((0, R_pad - R), (0, E_pad - E)))             # (R_pad, E_pad)

    out_itemsize = jnp.dtype(out_dtype).itemsize
    cost = pl.CostEstimate(
        flops=2 * B * R_pad * K_pad * E_pad,
        transcendentals=0,
        bytes_accessed=(patches.size * 2 + w_mat.size * 2 + posb.size * 4
                        + B * R_pad * E_pad * out_itemsize),
    )

    out = pl.pallas_call(
        _patch_embed_kernel,
        out_shape=jax.ShapeDtypeStruct((B, R_pad, E_pad), out_dtype),
        grid_spec=pltpu.PrefetchScalarGridSpec(
            num_scalar_prefetch=0,
            grid=(B // Bt, nt),
            in_specs=[
                pl.BlockSpec((Bt, tile_n, K_pad), lambda b, t: (b, t, 0)),  # patches
                pl.BlockSpec((K_pad, E_pad), lambda b, t: (0, 0)),          # weight
                pl.BlockSpec((tile_n, E_pad), lambda b, t: (t, 0)),         # pos+bias
            ],
            out_specs=pl.BlockSpec((Bt, tile_n, E_pad), lambda b, t: (b, t, 0)),
        ),
        # Output is tiled along rows, so every block is independent: both grid
        # axes are parallel (v7x 2-TC sharding even at B=1), and VMEM use is
        # bounded by the tile sizes (no resident full-(N+1,E) block).
        compiler_params=pltpu.CompilerParams(
            dimension_semantics=("parallel", "parallel")),
        cost_estimate=cost,
    )(patches, w_mat, posb)

    if R_pad != R or E_pad != E:
        out = out[:, :R, :E]
    return out


def reference(x, conv_w, conv_b, cls_token, pos_token, patch_size):
    """Pure-JAX f32 reference of the PyTorch forward (eval mode)."""
    B, C, H, W = x.shape
    P = patch_size
    nh, nw = H // P, W // P
    N = nh * nw
    E = conv_w.shape[0]
    patches = x.reshape(B, C, nh, P, nw, P).transpose(0, 2, 4, 1, 3, 5)
    patches = patches.reshape(B, N, C * P * P)
    emb = patches @ conv_w.reshape(E, -1).T + conv_b               # (B, N, E)
    cls = jnp.broadcast_to(cls_token.reshape(1, 1, E), (B, 1, E))
    return jnp.concatenate([cls, emb], axis=1) + pos_token.reshape(1, N + 1, E)


if __name__ == "__main__":
    # Small deterministic config: image 16x16, patch 4 -> 16 patches (+1 cls)
    B, C, H = 2, 4, 16
    patch_size = 4
    embed_dim = 32
    num_patches = (H // patch_size) ** 2

    key = jax.random.PRNGKey(0)
    kx, kw, kb, kc, kp = jax.random.split(key, 5)
    x = jax.random.normal(kx, (B, C, H, H), dtype=jnp.float32)
    conv_w = jax.random.normal(kw, (embed_dim, C, patch_size, patch_size),
                               dtype=jnp.float32) * 0.05
    conv_b = jax.random.normal(kb, (embed_dim,), dtype=jnp.float32) * 0.05
    cls_token = jax.random.normal(kc, (1, 1, embed_dim), dtype=jnp.float32)
    pos_token = jax.random.normal(kp, (1, num_patches + 1, embed_dim),
                                  dtype=jnp.float32)

    out = patch_embedding(x, conv_w, conv_b, cls_token, pos_token, patch_size)
    out = jax.block_until_ready(out)

    ref = reference(x, conv_w, conv_b, cls_token, pos_token, patch_size)
    assert out.shape == (B, num_patches + 1, embed_dim), out.shape
    # Tolerance loosened vs. 1e-4 because matmul operands are bf16 (f32 acc).
    assert jnp.allclose(out, ref, atol=5e-2, rtol=5e-2), "mismatch vs reference"
    print("KERNEL_OK")
</pallas_src>

<mosaic_0001>
module attributes {stable_mosaic.version = 11 : i64} {
  func.func @_patch_embed_kernel(%arg0: i32, %arg1: i32, %arg2: memref<2x24x128xbf16, #tpu.memory_space<vmem>>, %arg3: memref<128x128xbf16, #tpu.memory_space<vmem>>, %arg4: memref<24x128xf32, #tpu.memory_space<vmem>>, %arg5: memref<2x24x128xf32, #tpu.memory_space<vmem>>) attributes {dimension_semantics = [#tpu.dimension_semantics<parallel>, #tpu.dimension_semantics<parallel>], iteration_bounds = array<i64: 1, 1>, scalar_prefetch = 0 : i64, scratch_operands = 0 : i64, tpu.core_type = #tpu.core_type<tc>, window_params = [{transform_indices = @transform_0, window_bounds = array<i64: 2, 24, 128>}, {pipeline_mode = #tpu.pipeline_mode<synchronous>, transform_indices = @transform_1, window_bounds = array<i64: 128, 128>}, {transform_indices = @transform_2, window_bounds = array<i64: 24, 128>}, {transform_indices = @transform_3, window_bounds = array<i64: 2, 24, 128>}]} {
    %c0 = arith.constant 0 : index
    %c0_0 = arith.constant 0 : index
    %c0_1 = arith.constant 0 : index
    %0 = vector.load %arg2[%c0, %c0_0, %c0_1] : memref<2x24x128xbf16, #tpu.memory_space<vmem>>, vector<1x24x128xbf16>
    %1 = vector.shape_cast %0 : vector<1x24x128xbf16> to vector<24x128xbf16>
    %c0_2 = arith.constant 0 : index
    %c0_3 = arith.constant 0 : index
    %2 = vector.load %arg3[%c0_2, %c0_3] : memref<128x128xbf16, #tpu.memory_space<vmem>>, vector<128x128xbf16>
    %cst = arith.constant dense<0.000000e+00> : vector<24x128xf32>
    %3 = tpu.matmul %1, %2, %cst {dimension_numbers = #tpu.dot_dimension_numbers<[1], [0], [0], [1], [0, 0, 1, 1], [], []>} : vector<24x128xbf16>, vector<128x128xbf16>, vector<24x128xf32> -> vector<24x128xf32>
    %c0_4 = arith.constant 0 : index
    %c0_5 = arith.constant 0 : index
    %4 = vector.load %arg4[%c0_4, %c0_5] : memref<24x128xf32, #tpu.memory_space<vmem>>, vector<24x128xf32>
    %5 = arith.addf %3, %4 : vector<24x128xf32>
    %c0_6 = arith.constant 0 : index
    %c0_7 = arith.constant 0 : index
    %c0_8 = arith.constant 0 : index
    %6 = vector.load %arg5[%c0_6, %c0_7, %c0_8] : memref<2x24x128xf32, #tpu.memory_space<vmem>>, vector<1x24x128xf32>
    %7 = vector.shape_cast %6 : vector<1x24x128xf32> to vector<24x128xf32>
    %8 = vector.shape_cast %5 : vector<24x128xf32> to vector<1x24x128xf32>
    tpu.vector_store %arg5[%c0_6, %c0_7, %c0_8], %8 {strides = array<i32>} : memref<2x24x128xf32, #tpu.memory_space<vmem>>, vector<1x24x128xf32>,
    %c1 = arith.constant 1 : index
    %c0_9 = arith.constant 0 : index
    %c0_10 = arith.constant 0 : index
    %9 = vector.load %arg2[%c1, %c0_9, %c0_10] : memref<2x24x128xbf16, #tpu.memory_space<vmem>>, vector<1x24x128xbf16>
    %10 = vector.shape_cast %9 : vector<1x24x128xbf16> to vector<24x128xbf16>
    %c0_11 = arith.constant 0 : index
    %c0_12 = arith.constant 0 : index
    %11 = vector.load %arg3[%c0_11, %c0_12] : memref<128x128xbf16, #tpu.memory_space<vmem>>, vector<128x128xbf16>
    %cst_13 = arith.constant dense<0.000000e+00> : vector<24x128xf32>
    %12 = tpu.matmul %10, %11, %cst_13 {dimension_numbers = #tpu.dot_dimension_numbers<[1], [0], [0], [1], [0, 0, 1, 1], [], []>} : vector<24x128xbf16>, vector<128x128xbf16>, vector<24x128xf32> -> vector<24x128xf32>
    %c0_14 = arith.constant 0 : index
    %c0_15 = arith.constant 0 : index
    %13 = vector.load %arg4[%c0_14, %c0_15] : memref<24x128xf32, #tpu.memory_space<vmem>>, vector<24x128xf32>
    %14 = arith.addf %12, %13 : vector<24x128xf32>
    %c1_16 = arith.constant 1 : index
    %c0_17 = arith.constant 0 : index
    %c0_18 = arith.constant 0 : index
    %15 = vector.load %arg5[%c1_16, %c0_17, %c0_18] : memref<2x24x128xf32, #tpu.memory_space<vmem>>, vector<1x24x128xf32>
    %16 = vector.shape_cast %15 : vector<1x24x128xf32> to vector<24x128xf32>
    %17 = vector.shape_cast %14 : vector<24x128xf32> to vector<1x24x128xf32>
    tpu.vector_store %arg5[%c1_16, %c0_17, %c0_18], %17 {strides = array<i32>} : memref<2x24x128xf32, #tpu.memory_space<vmem>>, vector<1x24x128xf32>,
    return
  }
  func.func @transform_0(%arg0: i32, %arg1: i32) -> (i32, i32, i32) {
    %c0_i32 = arith.constant 0 : i32
    %c0_i32_0 = arith.constant 0 : i32
    return %arg0, %arg1, %c0_i32 : i32, i32, i32
  }
  func.func @transform_1(%arg0: i32, %arg1: i32) -> (i32, i32) {
    %c0_i32 = arith.constant 0 : i32
    %c0_i32_0 = arith.constant 0 : i32
    %c0_i32_1 = arith.constant 0 : i32
    return %c0_i32, %c0_i32_0 : i32, i32
  }
  func.func @transform_2(%arg0: i32, %arg1: i32) -> (i32, i32) {
    %c0_i32 = arith.constant 0 : i32
    %c0_i32_0 = arith.constant 0 : i32
    return %arg1, %c0_i32 : i32, i32
  }
  func.func @transform_3(%arg0: i32, %arg1: i32) -> (i32, i32, i32) {
    %c0_i32 = arith.constant 0 : i32
    %c0_i32_0 = arith.constant 0 : i32
    return %arg0, %arg1, %c0_i32 : i32, i32, i32
  }
}

</mosaic_0001>

<bundles_post_ra>
// kernel: tpu_custom_call.1
= control target key start
LH: loop header
LB: loop body
LE: loop exit
PB: predicated region body
PF: predicated region fallthrough
CT: control target
= control target key end

     0   :  { %8 = vsyncpa [#allocation3], 0  ;;  %s630_s0 = inlined_call_operand.hbm [shape: bf16[2,24,128], index: 0, kind: input, shape index: {}]   ;;  %s631_s1 = inlined_call_operand.hbm [shape: bf16[128,128], index: 1, kind: input, shape index: {}]   ;;  %s632_s2 = inlined_call_operand.hbm [shape: f32[24,128], index: 2, kind: input, shape index: {}]   ;;  %s633_s3 = inlined_call_operand.hbm [shape: f32[2,24,128], index: 3, kind: output, shape index: {}]  }
   0x1   :  { %9 = vsyncpa [#allocation6], 0 }
   0x2   :  { %10 = vsyncpa [#allocation4], 0  ;;  %s541_s12 = smov [#allocation5]   ;;  %s542_s14 = smov [#allocation2]  }
   0x3   :  { %s28_s13 = sshll.u32 %s541_s12, 4  ;;  %s16_s15 = sshll.u32 %s542_s14, 4  ;;  %s29_s13 = int_to_ptr.vmem [resolvable:$true] %s28_s13  ;;  %s569_s15 = int_to_ptr.vmem [resolvable:$true] %s16_s15 }
   0x4   :  { %s447_s18 = scalar_lea.hbm %s631_s1, 1024 }
   0x5   :  { %p448_p0 = scmp.ne.s32.totalorder %s631_s1, %s447_s18  ;;  %p451_p1 = scmp.lt.u32.totalorder %s447_s18, %s631_s1 }
   0x7   :  { %p453_p2 = pnand %p451_p1, %p448_p0 }
   0x9   :  { %456 = shalt.err (!%p453_p2)
}
   0xa   :  { %s457_s23 = scalar_lea.vmem %s29_s13, 1024  ;;  %p462_p4 = scmp.lt.s32.totalorder %s29_s13, %s29_s13 }
   0xb   :  { %p458_p3 = scmp.ne.s32.totalorder %s29_s13, %s457_s23  ;;  %p463_p5 = scmp.lt.s32.totalorder %s457_s23, %s457_s23 }
   0xd   :  { %p464_p6 = por %p463_p5, %p462_p4 }
   0xf   :  { %p465_p7 = pnand %p464_p6, %p458_p3 }
  0x11   :  { %468 = shalt.err (!%p465_p7)
}
  0x12   :  { %s543_s24 = smov 64   ;;  %s544_s25 = smov 4  }
  0x13   :  { %34 = dma.hbm_to_vmem [thread:$0]  %s631_s1, 1024, %s29_s13, [#allocation6], %s543_s24, %s543_s24, %s544_s25  }
  0x14   :  { %s469_s30 = scalar_lea.hbm %s630_s0, 384 }
  0x15   :  { %p470_p8 = scmp.ne.s32.totalorder %s630_s0, %s469_s30  ;;  %p473_p9 = scmp.lt.u32.totalorder %s469_s30, %s630_s0 }
  0x17   :  { %p475_p10 = pnand %p473_p9, %p470_p8 }
  0x19   :  { %478 = shalt.err (!%p475_p10)
}
  0x1a   :  { %s479_s8 = scalar_lea.vmem %s569_s15, 384  ;;  %p484_p12 = scmp.lt.s32.totalorder %s569_s15, %s569_s15 }
  0x1b   :  { %p480_p11 = scmp.ne.s32.totalorder %s569_s15, %s479_s8  ;;  %p485_p13 = scmp.lt.s32.totalorder %s479_s8, %s479_s8 }
  0x1d   :  { %p486_p0 = por %p485_p13, %p484_p12 }
  0x1f   :  { %p487_p1 = pnand %p486_p0, %p480_p11 }
  0x21   :  { %490 = shalt.err (!%p487_p1)
}
  0x22   :  { %22 = dma.hbm_to_vmem [thread:$0]  %s630_s0, 384, %s569_s15, [#allocation3], %s543_s24, %s543_s24, %s544_s25  }
  0x23   :  { %s545_s10 = smov [#allocation7]   ;;  %s491_s14 = scalar_lea.hbm %s632_s2, 384 }
  0x24   :  { %s40_s11 = sshll.u32 %s545_s10, 4  ;;  %p492_p2 = scmp.ne.s32.totalorder %s632_s2, %s491_s14  ;;  %s41_s11 = int_to_ptr.vmem [resolvable:$true] %s40_s11 }
  0x25   :  { %p495_p3 = scmp.lt.u32.totalorder %s491_s14, %s632_s2 }
  0x27   :  { %p497_p4 = pnand %p495_p3, %p492_p2 }
  0x29   :  { %500 = shalt.err (!%p497_p4)
}
  0x2a   :  { %s501_s20 = scalar_lea.vmem %s41_s11, 384  ;;  %p506_p6 = scmp.lt.s32.totalorder %s41_s11, %s41_s11 }
  0x2b   :  { %p502_p5 = scmp.ne.s32.totalorder %s41_s11, %s501_s20  ;;  %p507_p7 = scmp.lt.s32.totalorder %s501_s20, %s501_s20 }
  0x2d   :  { %p508_p8 = por %p507_p7, %p506_p6 }
  0x2f   :  { %p509_p9 = pnand %p508_p8, %p502_p5 }
  0x31   :  { %512 = shalt.err (!%p509_p9)
}
  0x32   :  { %s546_s0 = smov 128   ;;  %s547_s15 = smov 8  }
  0x33   :  { %46 = dma.hbm_to_vmem [thread:$0]  %s632_s2, 384, %s41_s11, [#allocation6], %s546_s0, %s546_s0, %s547_s15  }
  0x34   :  { %535 = dma.done.wait [#allocation3], 384  }
  0x35   :  { %536 = vsyncadd [#allocation3], 4294966912 }
  0x36   :  { %537 = dma.done.wait [#allocation6], 1408  }
  0x37   :  { %538 = vsyncadd [#allocation6], 4294965888  ;;  %v427_v0 = vld [vmem:[#allocation5] sm:$0xff]   ;;  %v429_v2 = vld [vmem:[#allocation5 + $0x8] sm:$0xff]   ;;  %s548_s2 = smov [#allocation8]  }
  0x38   :  { %v428_v1 = vld [vmem:[#allocation5] sm:$0xff]   ;;  %379 = vmatprep.subr.bf16.mxu0 %v427_v0  ;;  %v430_v3 = vld [vmem:[#allocation5 + $0x8] sm:$0xff]   ;;  %v431_v4 = vld [vmem:[#allocation5 + $0x10] sm:$0xff]   ;;  %s326_s23 = sshll.u32 %s548_s2, 4  ;;  %s327_s23 = int_to_ptr.vmem [resolvable:$true] %s326_s23 }
  0x39   :  { %399 = vmatprep.subr.bf16.mxu1 %v428_v1  ;;  %380 = vmatpush3.bf16.msra.mxu0 %v427_v0  ;;  %v432_v5 = vld [vmem:[#allocation5 + $0x10] sm:$0xff]   ;;  %v433_v6 = vld [vmem:[#allocation5 + $0x18] sm:$0xff]   ;;  %v435_v8 = vld [vmem:[#allocation5 + $0x20] sm:$0xff]   ;;  %s513_s24 = scalar_lea.vmem %s327_s23, 768  ;;  %p518_p11 = scmp.lt.s32.totalorder %s327_s23, %s327_s23 }
  0x3a   :  { %400 = vmatpush3.bf16.msra.mxu1 %v428_v1  ;;  %381 = vmatprep.subr.bf16.mxu0 %v429_v2  ;;  %v434_v7 = vld [vmem:[#allocation5 + $0x18] sm:$0xff]   ;;  %v436_v9 = vld [vmem:[#allocation5 + $0x20] sm:$0xff]   ;;  %v437_v10 = vld [vmem:[#allocation5 + $0x28] sm:$0xff]   ;;  %p514_p10 = scmp.ne.s32.totalorder %s327_s23, %s513_s24  ;;  %p519_p12 = scmp.lt.s32.totalorder %s513_s24, %s513_s24 }
  0x3b   :  { %401 = vmatprep.subr.bf16.mxu1 %v430_v3  ;;  %v438_v11 = vld [vmem:[#allocation5 + $0x28] sm:$0xff]   ;;  %v444_v13 = vld [vmem:[#allocation2 + $0xc] sm:$0xff]   ;;  %v445_v18 = vld [vmem:[#allocation2 + $0x8] ss:$0 sps:$4 sm:$0xff]  }
  0x3c   :  { %v443_v12 = vld [vmem:[#allocation2] sm:$0xff]   ;;  %415 = vmatprep.mubr.bf16.mxu1 %v444_v13  ;;  %v439_v14 = vld [vmem:[#allocation5 + $0x30] sm:$0xff]   ;;  %v441_v16 = vld [vmem:[#allocation5 + $0x38] sm:$0xff]   ;;  %p520_p13 = por %p519_p12, %p518_p11 }
  0x3d   :  { %382 = vmatpush3.bf16.msra.mxu0 %v429_v2  ;;  %395 = vmatprep.mubr.bf16.mxu0 %v443_v12  ;;  %v440_v15 = vld [vmem:[#allocation5 + $0x30] sm:$0xff]   ;;  %v442_v17 = vld [vmem:[#allocation5 + $0x38] sm:$0xff]   ;;  %v76_v21 = vld [vmem:[#allocation7] sm:$0xff] }
  0x3e   :  { %402 = vmatpush3.bf16.msra.mxu1 %v430_v3  ;;  %383 = vmatprep.subr.bf16.mxu0 %v431_v4  ;;  %v446_v19 = vld [vmem:[#allocation2 + $0x14] ss:$0 sps:$4 sm:$0xff]   ;;  %v78_v20 = vld [vmem:[#allocation7 + $0x10] sm:$0xff]  ;;  %v77_v26 = vld [vmem:[#allocation7 + $0x8] sm:$0xff]  ;;  %p521_p0 = pnand %p520_p13, %p514_p10 }
  0x3f   :  { %403 = vmatprep.subr.bf16.mxu1 %v432_v5 }
  0x41   :  { %384 = vmatpush3.bf16.msra.mxu0 %v431_v4 }
  0x42   :  { %404 = vmatpush3.bf16.msra.mxu1 %v432_v5  ;;  %385 = vmatprep.subr.bf16.mxu0 %v433_v6 }
  0x43   :  { %405 = vmatprep.subr.bf16.mxu1 %v434_v7 }
  0x45   :  { %386 = vmatpush3.bf16.msra.mxu0 %v433_v6 }
  0x46   :  { %406 = vmatpush3.bf16.msra.mxu1 %v434_v7  ;;  %387 = vmatprep.subr.bf16.mxu0 %v435_v8 }
  0x47   :  { %407 = vmatprep.subr.bf16.mxu1 %v436_v9 }
  0x49   :  { %388 = vmatpush3.bf16.msra.mxu0 %v435_v8 }
  0x4a   :  { %408 = vmatpush3.bf16.msra.mxu1 %v436_v9  ;;  %389 = vmatprep.subr.bf16.mxu0 %v437_v10 }
  0x4b   :  { %409 = vmatprep.subr.bf16.mxu1 %v438_v11 }
  0x4d   :  { %390 = vmatpush3.bf16.msra.mxu0 %v437_v10 }
  0x4e   :  { %410 = vmatpush3.bf16.msra.mxu1 %v438_v11  ;;  %391 = vmatprep.subr.bf16.mxu0 %v439_v14 }
  0x4f   :  { %411 = vmatprep.subr.bf16.mxu1 %v440_v15 }
  0x51   :  { %392 = vmatpush3.bf16.msra.mxu0 %v439_v14 }
  0x52   :  { %412 = vmatpush3.bf16.msra.mxu1 %v440_v15  ;;  %393 = vmatprep.subr.bf16.mxu0 %v441_v16 }
  0x53   :  { %413 = vmatprep.subr.bf16.mxu1 %v442_v17 }
  0x55   :  { %394 = vmatpush3.bf16.msra.mxu0 %v441_v16 }
  0x56   :  { %414 = vmatpush3.bf16.msra.mxu1 %v442_v17 }
  0x58   :  { %396 = vmatmul.mubr.bf16.vlgmr.msra.gmra.mrb[0].mxu0 %v445_v18 }
  0x59   :  { %416 = vmatmul.mubr.bf16.vlgmr.msra.gmra.mrb[0].mxu1 %v446_v19 }
 0x12b   :  { %v397_v22 = vpop.f32.mrb[0].mxu0 }
 0x12c   :  { %v180_v23 = vadd.f32 %v397_v22, %v78_v20  ;;  %v417_v24 = vpop.f32.mrb[0].mxu1  ;;  %v171_v25 = vpop.f32.mrb[1].mxu0 }
 0x12d   :  { %v312_v27 = vadd.f32 %v417_v24, %v78_v20  ;;  %v172_v28 = vadd.f32 %v171_v25, %v76_v21  ;;  %v303_v29 = vpop.f32.mrb[1].mxu1  ;;  %v398_v30 = vpop.f32.mrb[2].mxu0 }
 0x12e   :  { %187 = vst [vmem:[#allocation8 + $0x10] sm:$0xff] %v180_v23  ;;  %v304_v31 = vadd.f32 %v303_v29, %v76_v21  ;;  %v418_v32 = vpop.f32.mrb[2].mxu1  ;;  %v174_v33 = vpop.f32.mrb[3].mxu0 }
 0x12f   :  { %320 = vst [vmem:[#allocation8 + $0x28] sm:$0xff] %v312_v27  ;;  %185 = vst [vmem:[#allocation8] sm:$0xff] %v172_v28  ;;  %v175_v34 = vadd.f32 %v174_v33, %v77_v26  ;;  %v306_v35 = vpop.f32.mrb[3].mxu1 }
 0x130   :  { %318 = vst [vmem:[#allocation8 + $0x18] sm:$0xff] %v304_v31  ;;  %v307_v36 = vadd.f32 %v306_v35, %v77_v26 }
 0x131   :  { %186 = vst [vmem:[#allocation8 + $0x8] sm:$0xff] %v175_v34 }
 0x132   :  { %319 = vst [vmem:[#allocation8 + $0x20] sm:$0xff] %v307_v36 }
 0x133   :  { %524 = shalt.err (!%p521_p0)
}
 0x134   :  { %s525_s27 = scalar_lea.hbm %s633_s3, 768 }
 0x135   :  { %p526_p1 = scmp.ne.s32.totalorder %s633_s3, %s525_s27  ;;  %p529_p2 = scmp.lt.u32.totalorder %s525_s27, %s633_s3 }
 0x137   :  { %p531_p3 = pnand %p529_p2, %p526_p1 }
 0x139   :  { %534 = shalt.err (!%p531_p3)
}
 0x13a   :  { %332 = dma.vmem_to_hbm [thread:$0]  %s327_s23, 768, %s633_s3, [#allocation4], %s546_s0, %s546_s0, %s547_s15  }
 0x13b   :  { %539 = dma.done.wait [#allocation4], 768  }
 0x13c   :  { %540 = vsyncadd [#allocation4], 4294966528 }
 0x13d   :  { %336 = vsyncpa [#allocation3], 1 }
 0x13e   :  { %337 = vsyncpa [#allocation6], 1 }
 0x13f   :  { %338 = vsyncpa [#allocation4], 1 }

</bundles_post_ra>
